<compile_context>
chip_gen: v7x
topology: tpu7x:2x2x1
jax: 0.10.0
libtpu: 0.0.40
codegen_flags: <defaults>
</compile_context>

<pallas_src>
import jax
import jax.numpy as jnp
from jax.experimental import pallas as pl
from jax.experimental.pallas import tpu as pltpu


IN_FEATURES = 256                  # 512 // 2
BATCH_SIZE = 3                     # implied by reshape(2, 3) / reshape(1, 3)
POSE_OUT = 3 * (BATCH_SIZE - 1)    # 6
VEL_OUT = 3 * (BATCH_SIZE - 2)     # 3

PACKED_M = 8                       # f32 sublane-aligned LHS rows
PACKED_N = 128                     # lane-dense output width


def _vio_fused_kernel(x_ref, w_ref, b_ref, o_ref):
    """One MXU matmul + one VPU bias add + one unmasked lane-dense store.

    x_ref: (8, 256)   row 0 = x_p, row 1 = x_v, rows 2..7 = 0
    w_ref: (256, 128) cols 0:6 = linpose3.W^T, cols 6:9 = linvel3.W^T, rest 0
    b_ref: (8, 128)   [0, 0:6] = linpose3.b, [1, 6:9] = linvel3.b, rest 0
    o_ref: (8, 128)   valid entries: [0, 0:6] = x_, [1, 6:9] = x_vdot
    """
    o_ref[...] = (
        jnp.dot(x_ref[...], w_ref[...], preferred_element_type=jnp.float32)
        + b_ref[...]
    ).astype(o_ref.dtype)


def prepare_params(params):
    """One-time pack of PyTorch-layout weights into the fused kernel layout."""
    w_packed = jnp.zeros((IN_FEATURES, PACKED_N), jnp.float32)
    w_packed = w_packed.at[:, 0:POSE_OUT].set(params["linpose3_w"].T)
    w_packed = w_packed.at[:, POSE_OUT:POSE_OUT + VEL_OUT].set(
        params["linvel3_w"].T)

    b_packed = jnp.zeros((PACKED_M, PACKED_N), jnp.float32)
    b_packed = b_packed.at[0, 0:POSE_OUT].set(params["linpose3_b"])
    b_packed = b_packed.at[1, POSE_OUT:POSE_OUT + VEL_OUT].set(
        params["linvel3_b"])

    return {"w_packed": w_packed, "b_packed": b_packed}


_COST = pl.CostEstimate(
    flops=2 * PACKED_M * IN_FEATURES * PACKED_N,
    transcendentals=0,
    bytes_accessed=4 * (PACKED_M * IN_FEATURES           # LHS
                        + IN_FEATURES * PACKED_N         # RHS
                        + PACKED_M * PACKED_N            # bias
                        + PACKED_M * PACKED_N),          # output
)


def vio_net_forward(x_r, x_p, x_a, x_v, packed_params):
    """Mirrors vio_net.forward(x_r, x_p, x_a, x_v); x_r / x_a are unused."""
    del x_r, x_a

    # Per-call activation packing (cheap, 8 KiB): rows 0/1 carry x_p / x_v.
    lhs = jnp.zeros((PACKED_M, IN_FEATURES), jnp.float32)
    lhs = lhs.at[0, :].set(x_p.astype(jnp.float32))
    lhs = lhs.at[1, :].set(x_v.astype(jnp.float32))

    full = lambda shape: pl.BlockSpec(shape, lambda: tuple(0 for _ in shape))

    out = pl.pallas_call(
        _vio_fused_kernel,
        out_shape=jax.ShapeDtypeStruct((PACKED_M, PACKED_N), jnp.float32),
        grid=(),
        in_specs=[
            full((PACKED_M, IN_FEATURES)),
            full((IN_FEATURES, PACKED_N)),
            full((PACKED_M, PACKED_N)),
        ],
        out_specs=full((PACKED_M, PACKED_N)),
        cost_estimate=_COST,
    )(lhs, packed_params["w_packed"], packed_params["b_packed"])

    x_ = out[0, 0:POSE_OUT].reshape(2, 3)
    x_vdot = out[1, POSE_OUT:POSE_OUT + VEL_OUT].reshape(1, 3)
    # The module also returns the unused scalars 0, 0.
    return x_, x_vdot, 0, 0


def init_params(key):
    """Deterministic synthetic init matching PyTorch nn.Linear shapes."""
    k1, k2, k3, k4 = jax.random.split(key, 4)
    bound = 1.0 / jnp.sqrt(jnp.float32(IN_FEATURES))
    params = {
        "linpose3_w": jax.random.uniform(
            k1, (POSE_OUT, IN_FEATURES), jnp.float32, -bound, bound),
        "linpose3_b": jax.random.uniform(
            k2, (POSE_OUT,), jnp.float32, -bound, bound),
        "linvel3_w": jax.random.uniform(
            k3, (VEL_OUT, IN_FEATURES), jnp.float32, -bound, bound),
        "linvel3_b": jax.random.uniform(
            k4, (VEL_OUT,), jnp.float32, -bound, bound),
    }
    # biases_x / biases_dx exist in __init__ but are unused in forward();
    # kept only for parameter parity.
    params["biases_x"] = jnp.zeros((6,), jnp.float32)
    params["biases_dx"] = jnp.zeros((3,), jnp.float32)
    return params


if __name__ == "__main__":
    key = jax.random.PRNGKey(0)
    kp, kx1, kx2 = jax.random.split(key, 3)
    params = init_params(kp)
    packed = prepare_params(params)          # one-time weight pack

    # forward(x_r, x_p, x_a, x_v); only x_p and x_v are used.
    x_r = 0
    x_a = 0
    x_p = jax.random.normal(kx1, (IN_FEATURES,), jnp.float32)
    x_v = jax.random.normal(kx2, (IN_FEATURES,), jnp.float32)

    x_, x_vdot, _, _ = vio_net_forward(x_r, x_p, x_a, x_v, packed)
    jax.block_until_ready((x_, x_vdot))

    # Pure-JAX reference check of the two linear heads.
    ref_pose = (x_p @ params["linpose3_w"].T + params["linpose3_b"]).reshape(2, 3)
    ref_vel = (x_v @ params["linvel3_w"].T + params["linvel3_b"]).reshape(1, 3)
    assert x_.shape == (2, 3) and x_vdot.shape == (1, 3)
    assert jnp.allclose(x_, ref_pose, atol=1e-5), "pose mismatch"
    assert jnp.allclose(x_vdot, ref_vel, atol=1e-5), "vel mismatch"

    print("KERNEL_OK")
</pallas_src>

<mosaic_0001>
module attributes {stable_mosaic.version = 11 : i64} {
  func.func @_vio_fused_kernel(%arg0: memref<8x256xf32, #tpu.memory_space<vmem>>, %arg1: memref<256x128xf32, #tpu.memory_space<vmem>>, %arg2: memref<8x128xf32, #tpu.memory_space<vmem>>, %arg3: memref<8x128xf32, #tpu.memory_space<vmem>>) attributes {dimension_semantics = [], scalar_prefetch = 0 : i64, scratch_operands = 0 : i64, tpu.core_type = #tpu.core_type<tc>} {
    %c0 = arith.constant 0 : index
    %c0_0 = arith.constant 0 : index
    %0 = vector.load %arg0[%c0, %c0_0] : memref<8x256xf32, #tpu.memory_space<vmem>>, vector<8x256xf32>
    %c0_1 = arith.constant 0 : index
    %c0_2 = arith.constant 0 : index
    %1 = vector.load %arg1[%c0_1, %c0_2] : memref<256x128xf32, #tpu.memory_space<vmem>>, vector<256x128xf32>
    %cst = arith.constant dense<0.000000e+00> : vector<8x128xf32>
    %2 = tpu.matmul %0, %1, %cst {dimension_numbers = #tpu.dot_dimension_numbers<[1], [0], [0], [1], [0, 0, 1, 1], [], []>} : vector<8x256xf32>, vector<256x128xf32>, vector<8x128xf32> -> vector<8x128xf32>
    %c0_3 = arith.constant 0 : index
    %c0_4 = arith.constant 0 : index
    %3 = vector.load %arg2[%c0_3, %c0_4] : memref<8x128xf32, #tpu.memory_space<vmem>>, vector<8x128xf32>
    %4 = arith.addf %2, %3 : vector<8x128xf32>
    %c0_5 = arith.constant 0 : index
    %c0_6 = arith.constant 0 : index
    %5 = vector.load %arg3[%c0_5, %c0_6] : memref<8x128xf32, #tpu.memory_space<vmem>>, vector<8x128xf32>
    tpu.vector_store %arg3[%c0_5, %c0_6], %4 {strides = array<i32>} : memref<8x128xf32, #tpu.memory_space<vmem>>, vector<8x128xf32>,
    return
  }
}

</mosaic_0001>

<bundles_post_ra>
// kernel: tpu_custom_call.1
= control target key start
LH: loop header
LB: loop body
LE: loop exit
PB: predicated region body
PF: predicated region fallthrough
CT: control target
= control target key end

     0   :  { %8 = vsyncpa [#allocation3], 0  ;;  %s415_s0 = inlined_call_operand.hbm [shape: f32[8,256], index: 0, kind: input, shape index: {}]   ;;  %s416_s1 = inlined_call_operand.hbm [shape: f32[256,128], index: 1, kind: input, shape index: {}]   ;;  %s417_s2 = inlined_call_operand.hbm [shape: f32[8,128], index: 2, kind: input, shape index: {}]   ;;  %s418_s3 = inlined_call_operand.hbm [shape: f32[8,128], index: 3, kind: output, shape index: {}]  }
   0x1   :  { %9 = vsyncpa [#allocation6], 0 }
   0x2   :  { %10 = vsyncpa [#allocation4], 0  ;;  %s341_s12 = smov [#allocation5]   ;;  %s247_s16 = scalar_lea.hbm %s416_s1, 4096 }
   0x3   :  { %s26_s13 = sshll.u32 %s341_s12, 4  ;;  %p248_p0 = scmp.ne.s32.totalorder %s416_s1, %s247_s16  ;;  %s27_s13 = int_to_ptr.vmem [resolvable:$true] %s26_s13 }
   0x4   :  { %p251_p1 = scmp.lt.u32.totalorder %s247_s16, %s416_s1 }
   0x6   :  { %p253_p2 = pnand %p251_p1, %p248_p0 }
   0x8   :  { %256 = shalt.err (!%p253_p2)
}
   0x9   :  { %s257_s21 = scalar_lea.vmem %s27_s13, 4096  ;;  %p262_p4 = scmp.lt.s32.totalorder %s27_s13, %s27_s13 }
   0xa   :  { %p258_p3 = scmp.ne.s32.totalorder %s27_s13, %s257_s21  ;;  %p263_p5 = scmp.lt.s32.totalorder %s257_s21, %s257_s21 }
   0xc   :  { %p264_p6 = por %p263_p5, %p262_p4 }
   0xe   :  { %p265_p7 = pnand %p264_p6, %p258_p3 }
  0x10   :  { %268 = shalt.err (!%p265_p7)
}
  0x11   :  { %s342_s22 = smov 128   ;;  %s343_s23 = smov 8  }
  0x12   :  { %32 = dma.hbm_to_vmem [thread:$0]  %s416_s1, 4096, %s27_s13, [#allocation6], %s342_s22, %s342_s22, %s343_s23  }
  0x13   :  { %s344_s26 = smov [#allocation2]   ;;  %s345_s28 = smov [#allocation7]  }
  0x14   :  { %s17_s27 = sshll.u32 %s344_s26, 4  ;;  %s39_s29 = sshll.u32 %s345_s28, 4  ;;  %s18_s27 = int_to_ptr.vmem [resolvable:$true] %s17_s27  ;;  %s40_s29 = int_to_ptr.vmem [resolvable:$true] %s39_s29 }
  0x15   :  { %s269_s5 = scalar_lea.hbm %s415_s0, 256 }
  0x16   :  { %p270_p8 = scmp.ne.s32.totalorder %s415_s0, %s269_s5  ;;  %p273_p9 = scmp.lt.u32.totalorder %s269_s5, %s415_s0 }
  0x18   :  { %p275_p10 = pnand %p273_p9, %p270_p8 }
  0x1a   :  { %278 = shalt.err (!%p275_p10)
}
  0x1b   :  { %s279_s1 = scalar_lea.vmem %s18_s27, 256  ;;  %p284_p12 = scmp.lt.s32.totalorder %s18_s27, %s18_s27 }
  0x1c   :  { %p280_p11 = scmp.ne.s32.totalorder %s18_s27, %s279_s1  ;;  %p285_p13 = scmp.lt.s32.totalorder %s279_s1, %s279_s1 }
  0x1e   :  { %p286_p0 = por %p285_p13, %p284_p12 }
  0x20   :  { %p287_p1 = pnand %p286_p0, %p280_p11 }
  0x22   :  { %290 = shalt.err (!%p287_p1)
}
  0x23   :  { %20 = dma.hbm_to_vmem [thread:$0]  %s415_s0, 256, %s18_s27, [#allocation3]  }
  0x24   :  { %s291_s14 = scalar_lea.hbm %s417_s2, 128 }
  0x25   :  { %p292_p2 = scmp.ne.s32.totalorder %s417_s2, %s291_s14  ;;  %p295_p3 = scmp.lt.u32.totalorder %s291_s14, %s417_s2 }
  0x27   :  { %p297_p4 = pnand %p295_p3, %p292_p2 }
  0x29   :  { %300 = shalt.err (!%p297_p4)
}
  0x2a   :  { %s301_s19 = scalar_lea.vmem %s40_s29, 128  ;;  %p306_p6 = scmp.lt.s32.totalorder %s40_s29, %s40_s29 }
  0x2b   :  { %p302_p5 = scmp.ne.s32.totalorder %s40_s29, %s301_s19  ;;  %p307_p7 = scmp.lt.s32.totalorder %s301_s19, %s301_s19 }
  0x2d   :  { %p308_p8 = por %p307_p7, %p306_p6 }
  0x2f   :  { %p309_p9 = pnand %p308_p8, %p302_p5 }
  0x31   :  { %312 = shalt.err (!%p309_p9)
}
  0x32   :  { %42 = dma.hbm_to_vmem [thread:$0]  %s417_s2, 128, %s40_s29, [#allocation6]  }
  0x33   :  { %335 = dma.done.wait [#allocation3], 256  }
  0x34   :  { %336 = vsyncadd [#allocation3], 4294967040 }
  0x35   :  { %337 = dma.done.wait [#allocation6], 4224  }
  0x36   :  { %338 = vsyncadd [#allocation6], 4294963072  ;;  %v70_v0 = vld [vmem:[#allocation5 + $0x80] sm:$0xff]  ;;  %v71_v1 = vld [vmem:[#allocation5 + $0x88] sm:$0xff]  ;;  %s346_s2 = smov [#allocation8]  }
  0x37   :  { %v54_v2 = vld [vmem:[#allocation5] sm:$0xff]  ;;  %v209_v3 = vpack.c.bf16 %v71_v1, %v70_v0  ;;  %v55_v4 = vld [vmem:[#allocation5 + $0x8] sm:$0xff]  ;;  %v72_v5 = vld [vmem:[#allocation5 + $0x90] sm:$0xff]  ;;  %s164_s21 = sshll.u32 %s346_s2, 4  ;;  %s165_s21 = int_to_ptr.vmem [resolvable:$true] %s164_s21 }
  0x38   :  { %v73_v6 = vld [vmem:[#allocation5 + $0x98] sm:$0xff]  ;;  %v211_v7 = vpack.c.bf16 %v55_v4, %v54_v2  ;;  %v56_v9 = vld [vmem:[#allocation5 + $0x10] sm:$0xff]  ;;  %v74_v11 = vld [vmem:[#allocation5 + $0xa0] sm:$0xff]  ;;  %s313_s22 = scalar_lea.vmem %s165_s21, 128  ;;  %p318_p11 = scmp.lt.s32.totalorder %s165_s21, %s165_s21 }
  0x39   :  { %v213_v8 = vpack.c.bf16 %v73_v6, %v72_v5  ;;  %v57_v10 = vld [vmem:[#allocation5 + $0x18] sm:$0xff]  ;;  %210 = vmatprep.subr.bf16.mxu0 %v209_v3  ;;  %v75_v12 = vld [vmem:[#allocation5 + $0xa8] sm:$0xff]  ;;  %v58_v15 = vld [vmem:[#allocation5 + $0x20] sm:$0xff]  ;;  %p314_p10 = scmp.ne.s32.totalorder %s165_s21, %s313_s22  ;;  %p319_p12 = scmp.lt.s32.totalorder %s313_s22, %s313_s22 }
  0x3a   :  { %212 = vmatpush3.bf16.msra.mxu0 %v211_v7  ;;  %v215_v13 = vpack.c.bf16 %v57_v10, %v56_v9  ;;  %v217_v14 = vpack.c.bf16 %v75_v12, %v74_v11  ;;  %v59_v16 = vld [vmem:[#allocation5 + $0x28] sm:$0xff]  ;;  %v76_v17 = vld [vmem:[#allocation5 + $0xb0] sm:$0xff]  ;;  %v77_v18 = vld [vmem:[#allocation5 + $0xb8] sm:$0xff] }
  0x3b   :  { %214 = vmatprep.subr.bf16.mxu0 %v213_v8  ;;  %v219_v19 = vpack.c.bf16 %v59_v16, %v58_v15  ;;  %v221_v20 = vpack.c.bf16 %v77_v18, %v76_v17  ;;  %v60_v21 = vld [vmem:[#allocation5 + $0x30] sm:$0xff]  ;;  %v61_v22 = vld [vmem:[#allocation5 + $0x38] sm:$0xff]  ;;  %v78_v23 = vld [vmem:[#allocation5 + $0xc0] sm:$0xff]  ;;  %p320_p13 = por %p319_p12, %p318_p11 }
  0x3c   :  { %v79_v24 = vld [vmem:[#allocation5 + $0xc8] sm:$0xff]  ;;  %v53_v25 = vld [vmem:[#allocation2 + $0x8] sm:$0xff]  ;;  %v223_v26 = vpack.c.bf16 %v61_v22, %v60_v21  ;;  %v62_v28 = vld [vmem:[#allocation5 + $0x40] sm:$0xff] }
  0x3d   :  { %151 = vmatprep.mubr.f32.mxu0 %v53_v25  ;;  %v225_v27 = vpack.c.bf16 %v79_v24, %v78_v23  ;;  %v63_v29 = vld [vmem:[#allocation5 + $0x48] sm:$0xff]  ;;  %v80_v30 = vld [vmem:[#allocation5 + $0xd0] sm:$0xff]  ;;  %v81_v31 = vld [vmem:[#allocation5 + $0xd8] sm:$0xff]  ;;  %p321_p0 = pnand %p320_p13, %p314_p10 }
  0x3e   :  { %216 = vmatpush3.bf16.msra.mxu0 %v215_v13  ;;  %v227_v32 = vpack.c.bf16 %v63_v29, %v62_v28  ;;  %v229_v33 = vpack.c.bf16 %v81_v31, %v80_v30  ;;  %v64_v34 = vld [vmem:[#allocation5 + $0x50] sm:$0xff]  ;;  %v65_v35 = vld [vmem:[#allocation5 + $0x58] sm:$0xff]  ;;  %v82_v36 = vld [vmem:[#allocation5 + $0xe0] sm:$0xff] }
  0x3f   :  { %218 = vmatprep.subr.bf16.mxu0 %v217_v14  ;;  %v83_v37 = vld [vmem:[#allocation5 + $0xe8] sm:$0xff]  ;;  %v231_v38 = vpack.c.bf16 %v65_v35, %v64_v34  ;;  %v66_v40 = vld [vmem:[#allocation5 + $0x60] sm:$0xff]  ;;  %v84_v42 = vld [vmem:[#allocation5 + $0xf0] sm:$0xff] }
  0x40   :  { %v233_v39 = vpack.c.bf16 %v83_v37, %v82_v36  ;;  %v67_v41 = vld [vmem:[#allocation5 + $0x68] sm:$0xff]  ;;  %v85_v43 = vld [vmem:[#allocation5 + $0xf8] sm:$0xff]  ;;  %v68_v46 = vld [vmem:[#allocation5 + $0x70] sm:$0xff] }
  0x41   :  { %v235_v44 = vpack.c.bf16 %v67_v41, %v66_v40  ;;  %v237_v45 = vpack.c.bf16 %v85_v43, %v84_v42  ;;  %v69_v47 = vld [vmem:[#allocation5 + $0x78] sm:$0xff]  ;;  %v52_v49 = vld [vmem:[#allocation2] sm:$0xff]  ;;  %v86_v51 = vld [vmem:[#allocation7] sm:$0xff] }
  0x42   :  { %220 = vmatpush3.bf16.msra.mxu0 %v219_v19  ;;  %v239_v48 = vpack.c.bf16 %v69_v47, %v68_v46 }
  0x43   :  { %222 = vmatprep.subr.bf16.mxu0 %v221_v20 }
  0x46   :  { %224 = vmatpush3.bf16.msra.mxu0 %v223_v26 }
  0x47   :  { %226 = vmatprep.subr.bf16.mxu0 %v225_v27 }
  0x4a   :  { %228 = vmatpush3.bf16.msra.mxu0 %v227_v32 }
  0x4b   :  { %230 = vmatprep.subr.bf16.mxu0 %v229_v33 }
  0x4e   :  { %232 = vmatpush3.bf16.msra.mxu0 %v231_v38 }
  0x4f   :  { %234 = vmatprep.subr.bf16.mxu0 %v233_v39 }
  0x52   :  { %236 = vmatpush3.bf16.msra.mxu0 %v235_v44 }
  0x53   :  { %238 = vmatprep.subr.bf16.mxu0 %v237_v45 }
  0x56   :  { %240 = vmatpush3.bf16.msra.mxu0 %v239_v48 }
  0x59   :  { %152 = vmatmul.mubr.f32.vlgmr.msra.gmra.mrb[0].mxu0 %v52_v49 }
 0x12c   :  { %v206_v50 = vpop.f32.mrb[0].mxu0 }
 0x12d   :  { %v207_v52 = vpop.f32.mrb[1].mxu0 }
 0x12e   :  { %v208_v53 = vadd.f32 %v207_v52, %v206_v50 }
 0x130   :  { %v154_v54 = vadd.f32 %v208_v53, %v86_v51 }
 0x132   :  { %157 = vst [vmem:[#allocation8] sm:$0xff] %v154_v54 }
 0x133   :  { %324 = shalt.err (!%p321_p0)
}
 0x134   :  { %s325_s25 = scalar_lea.hbm %s418_s3, 128 }
 0x135   :  { %p326_p1 = scmp.ne.s32.totalorder %s418_s3, %s325_s25  ;;  %p329_p2 = scmp.lt.u32.totalorder %s325_s25, %s418_s3 }
 0x137   :  { %p331_p3 = pnand %p329_p2, %p326_p1 }
 0x139   :  { %334 = shalt.err (!%p331_p3)
}
 0x13a   :  { %167 = dma.vmem_to_hbm [thread:$0]  %s165_s21, 128, %s418_s3, [#allocation4]  }
 0x13b   :  { %339 = dma.done.wait [#allocation4], 128  }
 0x13c   :  { %340 = vsyncadd [#allocation4], 4294967168 }
 0x13d   :  { %171 = vsyncpa [#allocation3], 1 }
 0x13e   :  { %172 = vsyncpa [#allocation6], 1 }
 0x13f   :  { %173 = vsyncpa [#allocation4], 1 }

</bundles_post_ra>
